<compile_context>
chip_gen: v6e
topology: v6e:2x2x1
jax: 0.10.0
libtpu: 0.0.40
codegen_flags: <defaults>
</compile_context>

<pallas_src>
import functools

import jax
import jax.numpy as jnp
from jax.experimental import pallas as pl
from jax.experimental.pallas import tpu as pltpu

_PCOL = 8  # zero-pad columns on each side of the reduced rows (>= K//2)


# ----------------------------- kernels --------------------------------------


def _fused_kernel(x_ref, w_ref, o_ref, rows_ref, *, K, pad):
    # x_ref   : (Bt, E, T) block in VMEM
    # w_ref   : (2*K,) conv taps in SMEM (first K: avg row, last K: max row)
    # rows_ref: (2, Bt, _PCOL + T + _PCOL) f32 scratch (padded avg/max rows)
    Bt, E, T = x_ref.shape
    x = x_ref[...]

    # Channel reductions: f32 accumulation for the mean (no explicit full f32
    # copy of the block), max is exact in the native dtype.
    avg = jnp.mean(x, axis=1, dtype=jnp.float32)            # (Bt, T)
    mx = jnp.max(x, axis=1).astype(jnp.float32)             # (Bt, T)

    # Zero only the pad columns (re-done every step: scratch persists per core
    # and a program_id==0 init would be unsafe under megacore sharding).
    rows_ref[:, :, :_PCOL] = jnp.zeros((2, Bt, _PCOL), jnp.float32)
    rows_ref[:, :, _PCOL + T:] = jnp.zeros((2, Bt, _PCOL), jnp.float32)
    rows_ref[0, :, _PCOL:_PCOL + T] = avg
    rows_ref[1, :, _PCOL:_PCOL + T] = mx

    # K-tap shift-and-accumulate conv; zero padding comes from the pad columns.
    conv = jnp.zeros((Bt, T), jnp.float32)
    for k in range(K):
        off = _PCOL - pad + k
        conv = conv + (w_ref[k] * rows_ref[0, :, off:off + T]
                       + w_ref[K + k] * rows_ref[1, :, off:off + T])

    att = jax.nn.sigmoid(conv)                               # (Bt, T) f32
    o_ref[...] = x * att[:, None, :].astype(x.dtype)


def _rows_kernel(x_ref, w_ref, att_ref, sum_ref, max_ref, rows_ref,
                 *, K, pad, E_total):
    # Pass 1 of the fallback path: E-chunked reduction + conv + sigmoid.
    # x_ref  : (1, Ec, T) block;  att_ref: (1, 1, T) f32 output
    # sum_ref/max_ref: (1, T) f32 accumulators (scratch, persist across chunks)
    e = pl.program_id(1)
    n_e = pl.num_programs(1)
    _, Ec, T = x_ref.shape
    x = x_ref[...]

    part_sum = jnp.sum(x, axis=1, dtype=jnp.float32)         # (1, T)
    part_max = jnp.max(x, axis=1).astype(jnp.float32)        # (1, T)

    @pl.when(e == 0)
    def _():
        sum_ref[...] = part_sum
        max_ref[...] = part_max

    @pl.when(e > 0)
    def _():
        sum_ref[...] = sum_ref[...] + part_sum
        max_ref[...] = jnp.maximum(max_ref[...], part_max)

    @pl.when(e == n_e - 1)
    def _():
        avg = sum_ref[...] * jnp.float32(1.0 / E_total)       # (1, T)
        mx = max_ref[...]
        rows_ref[:, :, :_PCOL] = jnp.zeros((2, 1, _PCOL), jnp.float32)
        rows_ref[:, :, _PCOL + T:] = jnp.zeros((2, 1, _PCOL), jnp.float32)
        rows_ref[0, :, _PCOL:_PCOL + T] = avg
        rows_ref[1, :, _PCOL:_PCOL + T] = mx
        conv = jnp.zeros((1, T), jnp.float32)
        for k in range(K):
            off = _PCOL - pad + k
            conv = conv + (w_ref[k] * rows_ref[0, :, off:off + T]
                           + w_ref[K + k] * rows_ref[1, :, off:off + T])
        att_ref[...] = jax.nn.sigmoid(conv)[:, None, :]


def _mul_kernel(att_ref, x_ref, o_ref):
    # Pass 2 of the fallback path: broadcast multiply.
    # att_ref: (1, 1, T) f32;  x_ref/o_ref: (1, Ec, T)
    x = x_ref[...]
    o_ref[...] = x * att_ref[...].astype(x.dtype)


# ----------------------------- sizing helpers --------------------------------


def _vmem_capacity_bytes():
    try:
        return int(pltpu.get_tpu_info().vmem_capacity_bytes)
    except Exception:
        return 64 << 20  # conservative default (v7x per-TensorCore VMEM)


def _fused_block_bytes(bt, E, T, itemsize):
    xblk = bt * E * T * itemsize
    rows = 2 * bt * (T + 2 * _PCOL) * 4
    # Headroom: possible f32 widening inside the reductions + (bt, T) temps.
    temps = bt * E * T * 4 + 8 * bt * T * 4
    return 4 * xblk + rows + temps          # 2 input + 2 output buffers


def _pick_block_batch(B, E, T, itemsize, budget):
    """Largest batch-block divisor of B that fits `budget` (None if none)."""
    best = None
    for d in range(1, B + 1):
        if B % d:
            continue
        if B >= 2 and B // d < 2:
            continue  # keep >=2 grid steps so both v7x TensorCores get work
        if _fused_block_bytes(d, E, T, itemsize) <= budget:
            best = d
    return best


def _pick_e_chunk(E, T, itemsize, budget):
    """E-chunk for the two-pass path: divisor of E, multiple of 8 (or E)."""
    def fits(ec):
        xblk = ec * T * itemsize
        temps = ec * T * 4 + 16 * T * 4
        return 4 * xblk + temps + (256 << 10) <= budget

    cands = [d for d in range(1, E + 1)
             if E % d == 0 and (d % 8 == 0 or d == E)]
    feas = [d for d in cands if fits(d)]
    return max(feas) if feas else min(cands)


# ----------------------------- public wrapper --------------------------------


def spatial_attention(x, w, *, block_batch=None, two_pass=None, e_chunk=None):
    """x: (B, E, T); w: (1, 2, K) Conv1d weight (out=1, in=2, K in {3, 7})."""
    B, E, T = x.shape
    K = w.shape[-1]
    assert w.shape == (1, 2, K) and K in (3, 7), "kernel size must be 3 or 7"
    pad = K // 2
    assert _PCOL >= pad

    w_taps = w[0].astype(jnp.float32).reshape(2 * K)   # flat SMEM taps

    itemsize = jnp.dtype(x.dtype).itemsize
    cap = _vmem_capacity_bytes()
    budget = (3 * cap) // 4                            # leave compiler headroom
    vmem_limit = int(budget)

    auto_bt = _pick_block_batch(B, E, T, itemsize, budget)
    if two_pass is None:
        two_pass = (block_batch is None) and (auto_bt is None)

    if not two_pass:
        # ---- fused single-pass path (1 HBM read + 1 HBM write of x) --------
        bt = block_batch if block_batch is not None else (auto_bt or 1)
        assert B % bt == 0
        kernel = functools.partial(_fused_kernel, K=K, pad=pad)
        return pl.pallas_call(
            kernel,
            out_shape=jax.ShapeDtypeStruct((B, E, T), x.dtype),
            grid=(B // bt,),
            in_specs=[
                pl.BlockSpec((bt, E, T), lambda b: (b, 0, 0)),
                pl.BlockSpec(memory_space=pltpu.MemorySpace.SMEM),
            ],
            out_specs=pl.BlockSpec((bt, E, T), lambda b: (b, 0, 0)),
            scratch_shapes=[pltpu.VMEM((2, bt, T + 2 * _PCOL), jnp.float32)],
            compiler_params=pltpu.CompilerParams(
                dimension_semantics=("parallel",),
                vmem_limit_bytes=vmem_limit),
        )(x, w_taps)

    # ---- two-pass E-chunked fallback (single (E,T) slab too big for VMEM) --
    ec = e_chunk if e_chunk is not None else _pick_e_chunk(E, T, itemsize, budget)
    assert E % ec == 0
    n_e = E // ec

    rows_kernel = functools.partial(_rows_kernel, K=K, pad=pad, E_total=E)
    att = pl.pallas_call(
        rows_kernel,
        out_shape=jax.ShapeDtypeStruct((B, 1, T), jnp.float32),
        grid=(B, n_e),
        in_specs=[
            pl.BlockSpec((1, ec, T), lambda b, e: (b, e, 0)),
            pl.BlockSpec(memory_space=pltpu.MemorySpace.SMEM),
        ],
        out_specs=pl.BlockSpec((1, 1, T), lambda b, e: (b, 0, 0)),
        scratch_shapes=[
            pltpu.VMEM((1, T), jnp.float32),
            pltpu.VMEM((1, T), jnp.float32),
            pltpu.VMEM((2, 1, T + 2 * _PCOL), jnp.float32),
        ],
        compiler_params=pltpu.CompilerParams(
            dimension_semantics=("parallel", "arbitrary"),
            vmem_limit_bytes=vmem_limit),
    )(x, w_taps)

    return pl.pallas_call(
        _mul_kernel,
        out_shape=jax.ShapeDtypeStruct((B, E, T), x.dtype),
        grid=(B, n_e),
        in_specs=[
            pl.BlockSpec((1, 1, T), lambda b, e: (b, 0, 0)),
            pl.BlockSpec((1, ec, T), lambda b, e: (b, e, 0)),
        ],
        out_specs=pl.BlockSpec((1, ec, T), lambda b, e: (b, e, 0)),
        compiler_params=pltpu.CompilerParams(
            dimension_semantics=("parallel", "parallel"),
            vmem_limit_bytes=vmem_limit),
    )(att, x)


def reference(x, w):
    """Pure-JAX reference matching the PyTorch forward."""
    pad = w.shape[-1] // 2
    avg = jnp.mean(x, axis=1, keepdims=True)
    mx = jnp.max(x, axis=1, keepdims=True)
    y = jnp.concatenate([avg, mx], axis=1)                   # (B, 2, T)
    conv = jax.lax.conv_general_dilated(
        y, w, window_strides=(1,), padding=[(pad, pad)],
        dimension_numbers=("NCH", "OIH", "NCH"))             # (B, 1, T)
    return x * jax.nn.sigmoid(conv)


if __name__ == "__main__":
    key = jax.random.PRNGKey(0)
    k1, k2, k3, k4, k5, k6 = jax.random.split(key, 6)

    ok = True

    # 1) Fused single-pass path, kernel_size=7.
    B, E, T = 2, 4, 16
    x = jax.random.normal(k1, (B, E, T), dtype=jnp.float32)
    w = jax.random.normal(k2, (1, 2, 7), dtype=jnp.float32) * 0.3
    out = jax.block_until_ready(spatial_attention(x, w))
    ref = jax.block_until_ready(reference(x, w))
    ok &= out.shape == (B, E, T)
    ok &= bool(jnp.allclose(out, ref, atol=1e-5, rtol=1e-5))

    # 2) Fused single-pass path, kernel_size=3.
    x3 = jax.random.normal(k3, (2, 8, 16), dtype=jnp.float32)
    w3 = jax.random.normal(k4, (1, 2, 3), dtype=jnp.float32) * 0.3
    out3 = jax.block_until_ready(spatial_attention(x3, w3))
    ref3 = jax.block_until_ready(reference(x3, w3))
    ok &= bool(jnp.allclose(out3, ref3, atol=1e-5, rtol=1e-5))

    # 3) Two-pass E-chunked fallback path (forced), exercises B==1 + 2 chunks.
    xl = jax.random.normal(k5, (1, 16, 32), dtype=jnp.float32)
    wl = jax.random.normal(k6, (1, 2, 7), dtype=jnp.float32) * 0.3
    outl = jax.block_until_ready(
        spatial_attention(xl, wl, two_pass=True, e_chunk=8))
    refl = jax.block_until_ready(reference(xl, wl))
    ok &= bool(jnp.allclose(outl, refl, atol=1e-5, rtol=1e-5))

    assert ok, "mismatch vs reference"
    print("KERNEL_OK")
</pallas_src>

<mosaic_0001>
module attributes {stable_mosaic.version = 11 : i64} {
  func.func @_fused_kernel(%arg0: i32, %arg1: memref<1x4x16xf32, #tpu.memory_space<vmem>>, %arg2: memref<14xf32, #tpu.memory_space<smem>>, %arg3: memref<1x4x16xf32, #tpu.memory_space<vmem>>, %arg4: memref<2x1x32xf32, #tpu.memory_space<vmem>>) attributes {dimension_semantics = [#tpu.dimension_semantics<parallel>], iteration_bounds = array<i64: 2>, scalar_prefetch = 0 : i64, scratch_operands = 1 : i64, tpu.core_type = #tpu.core_type<tc>, window_params = [{transform_indices = @transform_0, window_bounds = array<i64: 1, 4, 16>}, {transform_indices = @transform_1, window_bounds = array<i64: 14>}, {transform_indices = @transform_2, window_bounds = array<i64: 1, 4, 16>}]} {
    %c0 = arith.constant 0 : index
    %c0_0 = arith.constant 0 : index
    %c0_1 = arith.constant 0 : index
    %0 = vector.load %arg1[%c0, %c0_0, %c0_1] : memref<1x4x16xf32, #tpu.memory_space<vmem>>, vector<1x4x16xf32>
    %cst = arith.constant dense<0.000000e+00> : vector<1x16xf32>
    %1 = vector.multi_reduction <add>, %0, %cst [1] : vector<1x4x16xf32> to vector<1x16xf32>
    %cst_2 = arith.constant 4.000000e+00 : f32
    %2 = vector.broadcast %cst_2 : f32 to vector<1x16xf32>
    %3 = arith.divf %1, %2 : vector<1x16xf32>
    %cst_3 = arith.constant dense<0xFF800000> : vector<1x16xf32>
    %4 = vector.multi_reduction <maximumf>, %0, %cst_3 [1] : vector<1x4x16xf32> to vector<1x16xf32>
    %cst_4 = arith.constant 0.000000e+00 : f32
    %5 = vector.broadcast %cst_4 : f32 to vector<2x1x8xf32>
    %c0_5 = arith.constant 0 : index
    %c0_6 = arith.constant 0 : index
    %c0_7 = arith.constant 0 : index
    %6 = vector.load %arg4[%c0_5, %c0_6, %c0_7] : memref<2x1x32xf32, #tpu.memory_space<vmem>>, vector<2x1x8xf32>
    tpu.vector_store %arg4[%c0_5, %c0_6, %c0_7], %5 {strides = array<i32>} : memref<2x1x32xf32, #tpu.memory_space<vmem>>, vector<2x1x8xf32>,
    %cst_8 = arith.constant 0.000000e+00 : f32
    %7 = vector.broadcast %cst_8 : f32 to vector<2x1x8xf32>
    %c0_9 = arith.constant 0 : index
    %c0_10 = arith.constant 0 : index
    %c24 = arith.constant 24 : index
    %8 = vector.load %arg4[%c0_9, %c0_10, %c24] : memref<2x1x32xf32, #tpu.memory_space<vmem>>, vector<2x1x8xf32>
    tpu.vector_store %arg4[%c0_9, %c0_10, %c24], %7 {strides = array<i32>} : memref<2x1x32xf32, #tpu.memory_space<vmem>>, vector<2x1x8xf32>,
    %c0_11 = arith.constant 0 : index
    %c0_12 = arith.constant 0 : index
    %c8 = arith.constant 8 : index
    %9 = vector.load %arg4[%c0_11, %c0_12, %c8] : memref<2x1x32xf32, #tpu.memory_space<vmem>>, vector<1x1x16xf32>
    %10 = vector.shape_cast %9 : vector<1x1x16xf32> to vector<1x16xf32>
    %11 = vector.shape_cast %3 : vector<1x16xf32> to vector<1x1x16xf32>
    tpu.vector_store %arg4[%c0_11, %c0_12, %c8], %11 {strides = array<i32>} : memref<2x1x32xf32, #tpu.memory_space<vmem>>, vector<1x1x16xf32>,
    %c1 = arith.constant 1 : index
    %c0_13 = arith.constant 0 : index
    %c8_14 = arith.constant 8 : index
    %12 = vector.load %arg4[%c1, %c0_13, %c8_14] : memref<2x1x32xf32, #tpu.memory_space<vmem>>, vector<1x1x16xf32>
    %13 = vector.shape_cast %12 : vector<1x1x16xf32> to vector<1x16xf32>
    %14 = vector.shape_cast %4 : vector<1x16xf32> to vector<1x1x16xf32>
    tpu.vector_store %arg4[%c1, %c0_13, %c8_14], %14 {strides = array<i32>} : memref<2x1x32xf32, #tpu.memory_space<vmem>>, vector<1x1x16xf32>,
    %cst_15 = arith.constant 0.000000e+00 : f32
    %15 = vector.broadcast %cst_15 : f32 to vector<1x16xf32>
    %c0_16 = arith.constant 0 : index
    %16 = memref.load %arg2[%c0_16] : memref<14xf32, #tpu.memory_space<smem>>
    %c0_17 = arith.constant 0 : index
    %c0_18 = arith.constant 0 : index
    %c5 = arith.constant 5 : index
    %17 = vector.load %arg4[%c0_17, %c0_18, %c5] : memref<2x1x32xf32, #tpu.memory_space<vmem>>, vector<1x1x16xf32>
    %18 = vector.shape_cast %17 : vector<1x1x16xf32> to vector<1x16xf32>
    %19 = vector.broadcast %16 : f32 to vector<1x16xf32>
    %20 = arith.mulf %19, %18 : vector<1x16xf32>
    %c7 = arith.constant 7 : index
    %21 = memref.load %arg2[%c7] : memref<14xf32, #tpu.memory_space<smem>>
    %c1_19 = arith.constant 1 : index
    %c0_20 = arith.constant 0 : index
    %c5_21 = arith.constant 5 : index
    %22 = vector.load %arg4[%c1_19, %c0_20, %c5_21] : memref<2x1x32xf32, #tpu.memory_space<vmem>>, vector<1x1x16xf32>
    %23 = vector.shape_cast %22 : vector<1x1x16xf32> to vector<1x16xf32>
    %24 = vector.broadcast %21 : f32 to vector<1x16xf32>
    %25 = arith.mulf %24, %23 : vector<1x16xf32>
    %26 = arith.addf %20, %25 : vector<1x16xf32>
    %27 = arith.addf %15, %26 : vector<1x16xf32>
    %c1_22 = arith.constant 1 : index
    %28 = memref.load %arg2[%c1_22] : memref<14xf32, #tpu.memory_space<smem>>
    %c0_23 = arith.constant 0 : index
    %c0_24 = arith.constant 0 : index
    %c6 = arith.constant 6 : index
    %29 = vector.load %arg4[%c0_23, %c0_24, %c6] : memref<2x1x32xf32, #tpu.memory_space<vmem>>, vector<1x1x16xf32>
    %30 = vector.shape_cast %29 : vector<1x1x16xf32> to vector<1x16xf32>
    %31 = vector.broadcast %28 : f32 to vector<1x16xf32>
    %32 = arith.mulf %31, %30 : vector<1x16xf32>
    %c8_25 = arith.constant 8 : index
    %33 = memref.load %arg2[%c8_25] : memref<14xf32, #tpu.memory_space<smem>>
    %c1_26 = arith.constant 1 : index
    %c0_27 = arith.constant 0 : index
    %c6_28 = arith.constant 6 : index
    %34 = vector.load %arg4[%c1_26, %c0_27, %c6_28] : memref<2x1x32xf32, #tpu.memory_space<vmem>>, vector<1x1x16xf32>
    %35 = vector.shape_cast %34 : vector<1x1x16xf32> to vector<1x16xf32>
    %36 = vector.broadcast %33 : f32 to vector<1x16xf32>
    %37 = arith.mulf %36, %35 : vector<1x16xf32>
    %38 = arith.addf %32, %37 : vector<1x16xf32>
    %39 = arith.addf %27, %38 : vector<1x16xf32>
    %c2 = arith.constant 2 : index
    %40 = memref.load %arg2[%c2] : memref<14xf32, #tpu.memory_space<smem>>
    %c0_29 = arith.constant 0 : index
    %c0_30 = arith.constant 0 : index
    %c7_31 = arith.constant 7 : index
    %41 = vector.load %arg4[%c0_29, %c0_30, %c7_31] : memref<2x1x32xf32, #tpu.memory_space<vmem>>, vector<1x1x16xf32>
    %42 = vector.shape_cast %41 : vector<1x1x16xf32> to vector<1x16xf32>
    %43 = vector.broadcast %40 : f32 to vector<1x16xf32>
    %44 = arith.mulf %43, %42 : vector<1x16xf32>
    %c9 = arith.constant 9 : index
    %45 = memref.load %arg2[%c9] : memref<14xf32, #tpu.memory_space<smem>>
    %c1_32 = arith.constant 1 : index
    %c0_33 = arith.constant 0 : index
    %c7_34 = arith.constant 7 : index
    %46 = vector.load %arg4[%c1_32, %c0_33, %c7_34] : memref<2x1x32xf32, #tpu.memory_space<vmem>>, vector<1x1x16xf32>
    %47 = vector.shape_cast %46 : vector<1x1x16xf32> to vector<1x16xf32>
    %48 = vector.broadcast %45 : f32 to vector<1x16xf32>
    %49 = arith.mulf %48, %47 : vector<1x16xf32>
    %50 = arith.addf %44, %49 : vector<1x16xf32>
    %51 = arith.addf %39, %50 : vector<1x16xf32>
    %c3 = arith.constant 3 : index
    %52 = memref.load %arg2[%c3] : memref<14xf32, #tpu.memory_space<smem>>
    %c0_35 = arith.constant 0 : index
    %c0_36 = arith.constant 0 : index
    %c8_37 = arith.constant 8 : index
    %53 = vector.load %arg4[%c0_35, %c0_36, %c8_37] : memref<2x1x32xf32, #tpu.memory_space<vmem>>, vector<1x1x16xf32>
    %54 = vector.shape_cast %53 : vector<1x1x16xf32> to vector<1x16xf32>
    %55 = vector.broadcast %52 : f32 to vector<1x16xf32>
    %56 = arith.mulf %55, %54 : vector<1x16xf32>
    %c10 = arith.constant 10 : index
    %57 = memref.load %arg2[%c10] : memref<14xf32, #tpu.memory_space<smem>>
    %c1_38 = arith.constant 1 : index
    %c0_39 = arith.constant 0 : index
    %c8_40 = arith.constant 8 : index
    %58 = vector.load %arg4[%c1_38, %c0_39, %c8_40] : memref<2x1x32xf32, #tpu.memory_space<vmem>>, vector<1x1x16xf32>
    %59 = vector.shape_cast %58 : vector<1x1x16xf32> to vector<1x16xf32>
    %60 = vector.broadcast %57 : f32 to vector<1x16xf32>
    %61 = arith.mulf %60, %59 : vector<1x16xf32>
    %62 = arith.addf %56, %61 : vector<1x16xf32>
    %63 = arith.addf %51, %62 : vector<1x16xf32>
    %c4 = arith.constant 4 : index
    %64 = memref.load %arg2[%c4] : memref<14xf32, #tpu.memory_space<smem>>
    %c0_41 = arith.constant 0 : index
    %c0_42 = arith.constant 0 : index
    %c9_43 = arith.constant 9 : index
    %65 = vector.load %arg4[%c0_41, %c0_42, %c9_43] : memref<2x1x32xf32, #tpu.memory_space<vmem>>, vector<1x1x16xf32>
    %66 = vector.shape_cast %65 : vector<1x1x16xf32> to vector<1x16xf32>
    %67 = vector.broadcast %64 : f32 to vector<1x16xf32>
    %68 = arith.mulf %67, %66 : vector<1x16xf32>
    %c11 = arith.constant 11 : index
    %69 = memref.load %arg2[%c11] : memref<14xf32, #tpu.memory_space<smem>>
    %c1_44 = arith.constant 1 : index
    %c0_45 = arith.constant 0 : index
    %c9_46 = arith.constant 9 : index
    %70 = vector.load %arg4[%c1_44, %c0_45, %c9_46] : memref<2x1x32xf32, #tpu.memory_space<vmem>>, vector<1x1x16xf32>
    %71 = vector.shape_cast %70 : vector<1x1x16xf32> to vector<1x16xf32>
    %72 = vector.broadcast %69 : f32 to vector<1x16xf32>
    %73 = arith.mulf %72, %71 : vector<1x16xf32>
    %74 = arith.addf %68, %73 : vector<1x16xf32>
    %75 = arith.addf %63, %74 : vector<1x16xf32>
    %c5_47 = arith.constant 5 : index
    %76 = memref.load %arg2[%c5_47] : memref<14xf32, #tpu.memory_space<smem>>
    %c0_48 = arith.constant 0 : index
    %c0_49 = arith.constant 0 : index
    %c10_50 = arith.constant 10 : index
    %77 = vector.load %arg4[%c0_48, %c0_49, %c10_50] : memref<2x1x32xf32, #tpu.memory_space<vmem>>, vector<1x1x16xf32>
    %78 = vector.shape_cast %77 : vector<1x1x16xf32> to vector<1x16xf32>
    %79 = vector.broadcast %76 : f32 to vector<1x16xf32>
    %80 = arith.mulf %79, %78 : vector<1x16xf32>
    %c12 = arith.constant 12 : index
    %81 = memref.load %arg2[%c12] : memref<14xf32, #tpu.memory_space<smem>>
    %c1_51 = arith.constant 1 : index
    %c0_52 = arith.constant 0 : index
    %c10_53 = arith.constant 10 : index
    %82 = vector.load %arg4[%c1_51, %c0_52, %c10_53] : memref<2x1x32xf32, #tpu.memory_space<vmem>>, vector<1x1x16xf32>
    %83 = vector.shape_cast %82 : vector<1x1x16xf32> to vector<1x16xf32>
    %84 = vector.broadcast %81 : f32 to vector<1x16xf32>
    %85 = arith.mulf %84, %83 : vector<1x16xf32>
    %86 = arith.addf %80, %85 : vector<1x16xf32>
    %87 = arith.addf %75, %86 : vector<1x16xf32>
    %c6_54 = arith.constant 6 : index
    %88 = memref.load %arg2[%c6_54] : memref<14xf32, #tpu.memory_space<smem>>
    %c0_55 = arith.constant 0 : index
    %c0_56 = arith.constant 0 : index
    %c11_57 = arith.constant 11 : index
    %89 = vector.load %arg4[%c0_55, %c0_56, %c11_57] : memref<2x1x32xf32, #tpu.memory_space<vmem>>, vector<1x1x16xf32>
    %90 = vector.shape_cast %89 : vector<1x1x16xf32> to vector<1x16xf32>
    %91 = vector.broadcast %88 : f32 to vector<1x16xf32>
    %92 = arith.mulf %91, %90 : vector<1x16xf32>
    %c13 = arith.constant 13 : index
    %93 = memref.load %arg2[%c13] : memref<14xf32, #tpu.memory_space<smem>>
    %c1_58 = arith.constant 1 : index
    %c0_59 = arith.constant 0 : index
    %c11_60 = arith.constant 11 : index
    %94 = vector.load %arg4[%c1_58, %c0_59, %c11_60] : memref<2x1x32xf32, #tpu.memory_space<vmem>>, vector<1x1x16xf32>
    %95 = vector.shape_cast %94 : vector<1x1x16xf32> to vector<1x16xf32>
    %96 = vector.broadcast %93 : f32 to vector<1x16xf32>
    %97 = arith.mulf %96, %95 : vector<1x16xf32>
    %98 = arith.addf %92, %97 : vector<1x16xf32>
    %99 = arith.addf %87, %98 : vector<1x16xf32>
    %100 = arith.negf %99 : vector<1x16xf32>
    %101 = math.exp %100 : vector<1x16xf32>
    %cst_61 = arith.constant 1.000000e+00 : f32
    %102 = vector.broadcast %cst_61 : f32 to vector<1x16xf32>
    %103 = arith.addf %102, %101 : vector<1x16xf32>
    %104 = arith.divf %102, %103 : vector<1x16xf32>
    %105 = vector.shape_cast %104 : vector<1x16xf32> to vector<1x1x16xf32>
    %106 = vector.broadcast %105 : vector<1x1x16xf32> to vector<1x4x16xf32>
    %107 = arith.mulf %0, %106 : vector<1x4x16xf32>
    %c0_62 = arith.constant 0 : index
    %c0_63 = arith.constant 0 : index
    %c0_64 = arith.constant 0 : index
    %108 = vector.load %arg3[%c0_62, %c0_63, %c0_64] : memref<1x4x16xf32, #tpu.memory_space<vmem>>, vector<1x4x16xf32>
    tpu.vector_store %arg3[%c0_62, %c0_63, %c0_64], %107 {strides = array<i32>} : memref<1x4x16xf32, #tpu.memory_space<vmem>>, vector<1x4x16xf32>,
    return
  }
  func.func @transform_0(%arg0: i32) -> (i32, i32, i32) {
    %c0_i32 = arith.constant 0 : i32
    %c0_i32_0 = arith.constant 0 : i32
    %c0_i32_1 = arith.constant 0 : i32
    return %arg0, %c0_i32, %c0_i32_0 : i32, i32, i32
  }
  func.func @transform_1(%arg0: i32) -> i32 {
    %c0_i32 = arith.constant 0 : i32
    %c0_i32_0 = arith.constant 0 : i32
    return %c0_i32 : i32
  }
  func.func @transform_2(%arg0: i32) -> (i32, i32, i32) {
    %c0_i32 = arith.constant 0 : i32
    %c0_i32_0 = arith.constant 0 : i32
    %c0_i32_1 = arith.constant 0 : i32
    return %arg0, %c0_i32, %c0_i32_0 : i32, i32, i32
  }
}

</mosaic_0001>

<bundles_post_ra>
// kernel: tpu_custom_call.1
= control target key start
LH: loop header
LB: loop body
LE: loop exit
PB: predicated region body
PF: predicated region fallthrough
CT: control target
= control target key end

     0   :  { %7 = vsyncpa [#allocation4], 0  ;;  %s840_s0 = inlined_call_operand.hbm [shape: f32[2,4,16], index: 0, kind: input, shape index: {}]   ;;  %s841_s1 = inlined_call_operand.vmem [shape: f32[14], index: 1, kind: input, shape index: {}]   ;;  %s842_s2 = inlined_call_operand.hbm [shape: f32[2,4,16], index: 2, kind: output, shape index: {}]  }
   0x1   :  { %9 = vsyncpa [#allocation4 + $0x1], 0 }
   0x2   :  { %10 = vsyncpa [#allocation6], 0 }
   0x3   :  { %11 = vsyncpa [#allocation5], 0 }
   0x4   :  { %13 = vsyncpa [#allocation5 + $0x1], 0  ;;  %s639_s9 = smov 0   ;;  %s641_s10 = smov 0  }
   0x5   :  { %s643_s11 = smov 0   ;;  %s645_s12 = smov 0  }
   0x6 LB: > { %s660_s13 = sadd.s32 4294967295, %s611_s12   ;;  %s403_s14 = sadd.s32 4294967294, %s611_s12   ;;  %s611_s12 = sphi %s645_s12, %s865_s12   ;;  %s607_s11 = sphi %s643_s11, %s864_s11   ;;  %s603_s10 = sphi %s641_s10, %s863_s10   ;;  %s599_s9 = sphi %s639_s9, %s862_s9  }
   0x7   : > { %p39_p0 = scmp.ne.s32.totalorder %s603_s10, %s599_s9  ;;  %p843_p1 = scmp.eq.s32.totalorder %s660_s13, 0 }
   0x8   : > { %p90_p3 = scmp.eq.s32.totalorder %s403_s14, 1  ;;  %p404_p5 = scmp.ge.s32.totalorder %s611_s12, 1 }
   0x9   : > { %p669_p4 = por %p843_p1, %p39_p0  ;;  %p97_p7 = scmp.lt.s32.totalorder %s611_s12, 3 }
   0xa   : > { %p674_p6 = por %p90_p3, %p39_p0  ;;  %s110_s19 = sshll.u32 %s841_s1, 4  ;;  %s111_s19 = int_to_ptr.vmem [resolvable:$true] %s110_s19 }
   0xb   : > { %s847_s15 = scalar_select %p669_p4, 1, 0 }
   0xc   : > { %s848_s16 = scalar_select %p674_p6, 1, 0 }
   0xd   : > { %p682_p8 = pnand %p404_p5, %p97_p7  ;;  %s690_s21 = sadd.s32 1, %s611_s12  }
   0xe   : > { %s23_s23 = ssub.s32 %s611_s12, %s690_s21  ;;  %s26_s25 = sadd.s32 1, %s607_s11 }
   0xf   : > { %s849_s20 = scalar_select %p682_p8, 1, 0 }
  0x10   : > { %p439_p10 = pneg %p682_p8  ;;  %p700_p12 = scmp.eq.s32.totalorder %s23_s23, 0 }
  0x11   : > { %p33_p13 = scmp.ne.s32.totalorder %s607_s11, %s603_s10  ;;  %s500_s26 = scalar_lea.vmem %s111_s19, 16 }
  0x12   : > { %p694_p11 = pnand %p439_p10, %p843_p1  ;;  %p501_p0 = scmp.ne.s32.totalorder %s111_s19, %s500_s26 }
  0x13   : > { %p508_p9 = scmp.lt.s32.totalorder %s111_s19, %s111_s19  ;;  %p509_p2 = scmp.lt.s32.totalorder %s500_s26, %s500_s26 }
  0x14   : > { %p502_p3 = pneg %p694_p11 }
  0x15   : > { %p510_p10 = por %p509_p2, %p508_p9 }
  0x16   : > { %p503_p5 = pnand %p502_p3, %p501_p0 }
  0x18   : > { %p504_p7 = pneg %p503_p5 }
  0x1a   : > { %p511_p1 = pnand %p510_p10, %p504_p7 }
  0x1c   : > { %514 = shalt.err (!%p511_p1)
}
  0x1d   : > { %s613_s27 = smov [#allocation7]   ;;  %p34_p2 = scmp.eq.s32.totalorder %s611_s12, 0 }
  0x1e   : > { %442 = dma.vmem_to_smem (!%p694_p11), %s111_s19, 16, %s613_s27, [#allocation6]  }
  0x1f   : > { %s714_s28 = scalar_select %p700_p12, %s607_s11, %s26_s25  }
  0x20   : > { %p852_p1 = scmp.eq.s32.totalorder %s660_s13, 1  ;;  %p452_p0 = scmp.lt.s32.totalorder %s611_s12, 2 }
  0x21   : > { %s121_s30 = sand.u32 1, %s607_s11   ;;  %p35_p3 = por %p34_p2, %p33_p13 }
  0x22   : > { %p722_p9 = por %p852_p1, %p33_p13  ;;  %s407_s3 = sshll.u32 %s121_s30, 2 }
  0x23   : > { %s408_s4 = sshll.u32 %s611_s12, 6  ;;  %s125_s8 = scalar_lea.vmem [#allocation3], %s407_s3 }
  0x24   : > { %s853_s29 = scalar_select %p722_p9, 1, 0 }
  0x25   : > { %s735_s7 = scalar_lea.hbm %s840_s0, %s408_s4  ;;  %s132_s14 = sshll.u32 %s125_s8, 4  ;;  %s133_s14 = int_to_ptr.vmem [resolvable:$true] %s132_s14 }
  0x26   : > { %p737_p11 = pnand %p452_p0, %p35_p3  ;;  %s122_s18 = scalar_lea.sflag [#allocation4], %s121_s30 }
  0x27   : > { %s515_s19 = scalar_lea.hbm %s735_s7, 64  ;;  %s520_s24 = scalar_lea.hbm %s840_s0, 128 }
  0x28   : > { %p516_p12 = scmp.ne.s32.totalorder %s735_s7, %s515_s19  ;;  %p517_p13 = pneg %p737_p11 }
  0x29   : > { %p521_p10 = scmp.lt.s32.totalorder %s735_s7, %s840_s0  ;;  %p522_p2 = scmp.lt.s32.totalorder %s520_s24, %s515_s19 }
  0x2a   : > { %p518_p5 = pnand %p517_p13, %p516_p12 }
  0x2b   : > { %p523_p1 = por %p522_p2, %p521_p10 }
  0x2c   : > { %p519_p7 = pneg %p518_p5 }
  0x2e   : > { %p524_p0 = pnand %p523_p1, %p519_p7 }
  0x30   : > { %527 = shalt.err (!%p524_p0)
}
  0x31   : > { %s528_s27 = scalar_lea.vmem %s133_s14, 64  ;;  %s614_s30 = smov [#allocation3]  }
  0x32   : > { %p529_p3 = scmp.ne.s32.totalorder %s133_s14, %s528_s27  ;;  %s533_s3 = sshll.u32 %s614_s30, 4  ;;  %s534_s3 = int_to_ptr.vmem [resolvable:$false] %s533_s3 }
  0x33   : > { %s535_s4 = scalar_lea.vmem %s534_s3, 128  ;;  %p536_p12 = scmp.lt.s32.totalorder %s133_s14, %s534_s3 }
  0x34   : > { %p531_p6 = pnand %p529_p3, %p517_p13  ;;  %p537_p5 = scmp.lt.s32.totalorder %s535_s4, %s528_s27 }
  0x36   : > { %p532_p9 = pneg %p531_p6  ;;  %p538_p4 = por %p537_p5, %p536_p12 }
  0x38   : > { %p539_p8 = pnand %p538_p4, %p532_p9 }
  0x3a   : > { %542 = shalt.err (!%p539_p8)
}
  0x3b   : > { %446 = dma.hbm_to_vmem [thread:$0]  (!%p737_p11), %s735_s7, 64, %s133_s14, %s122_s18  }
  0x3c   : > { %p855_p7 = scmp.ne.s32.totalorder %s849_s20, 0 }
  0x3d   : > { %s758_s5 = sand.u32 (!%p855_p7), 1, %s603_s10   ;;  %p856_p4 = scmp.ne.s32.totalorder (!%p855_p7), %s847_s15, 0 }
  0x3e   : > { %141 = sbr.rel (%p855_p7) target bundleno = 514 (0x202), region = 28  ;;  %s410_s6 = sshll.u32 (!%p855_p7), %s758_s5, 2 }
  0x3f   : > { %s144_s8 = scalar_lea.sflag (!%p855_p7), [#allocation4], %s758_s5  ;;  %s147_s19 = scalar_lea.vmem (!%p855_p7), [#allocation3], %s410_s6 }
  0x43   : > { %586 = dma.done.wait (%p856_p4), %s144_s8, 64  }
  0x44   : > { %588 = vsyncadd (%p856_p4), %s144_s8, 4294967232  ;;  %p857_p6 = scmp.eq.s32.totalorder %s660_s13, 0 }
  0x46   : > { %590 = dma.done.wait (%p857_p6), [#allocation6], 16   ;;  %p858_p8 = pmov %p857_p6 }
  0x48   : > { %592 = vsyncadd (%p858_p8), [#allocation6], 4294967280 }
  0x49   : > { %156 = sfence }
  0x4a   : > { %v772_v0 = vld [vmem:[%s147_s19] sm:$0xf]  ;;  %vm174_vm0 = vcmask 125952   ;;  %vm191_vm1 = vcmask 57344   ;;  %v615_v3 = vmov 0.0   ;;  %vm194_vm2 = vcmask 254144  }
  0x4b   : > { %v175_v1 = vsel %vm174_vm0, %v772_v0, 0.0  ;;  %v184_v2 = vsel %vm174_vm0, %v772_v0, -inf  ;;  %192 = vst.msk [vmem:[#allocation2] sm:$0x1] %vm191_vm1, %v615_v3  ;;  %193 = vst.msk [vmem:[#allocation2 + $0x1] sm:$0x1] %vm191_vm1, %v615_v3 }
  0x4c   : > { %v176_v4 = vrot.slane %v175_v1, 4  ;;  %v185_v5 = vrot.slane %v184_v2, 4  ;;  %195 = vst.msk [vmem:[#allocation2] sm:$0x1] %vm194_vm2, %v615_v3  ;;  %196 = vst.msk [vmem:[#allocation2 + $0x1] sm:$0x1] %vm194_vm2, %v615_v3 }
  0x4d   : > { %s616_s15 = smov 8   ;;  %s418_s20 = sld [smem:[#allocation7 + $0x3]]  ;;  %vm201_vm3 = vcmask 188480  }
  0x4e   : > { %v177_v6 = vadd.f32 %v176_v4, %v175_v1  ;;  %v186_v7 = vmax.f32 %v184_v2, %v185_v5  ;;  %s414_s7 = sld [smem:[#allocation7 + $0x1]]  ;;  %s617_s8 = smov 125  }
  0x4f   : > { %s419_s14 = sld [smem:[#allocation7 + $0xa]]  ;;  %s618_s19 = smov 127  }
  0x50   : > { %v178_v8 = vrot.slane %v177_v6, 2  ;;  %v187_v9 = vrot.slane %v186_v7, 2  ;;  %s415_s17 = sld [smem:[#allocation7 + $0x8]]  ;;  %p859_p11 = scmp.ne.s32.totalorder %s853_s29, 0 }
  0x51   : > { %s778_s18 = sld [smem:[#allocation7 + $0xc]] }
  0x52   : > { %v179_v10 = vadd.f32 %v178_v8, %v177_v6  ;;  %v188_v11 = vmax.f32 %v186_v7, %v187_v9  ;;  %s209_s22 = sld [smem:[#allocation7]]  ;;  %v298_v8 = vlaneseq }
  0x53   : > { %s413_s23 = sld [smem:[#allocation7 + $0x7]]  ;;  %v244_v20 = vstv %s418_s20  ;;  %s620_s20 = smov 126  }
  0x54   : > { %v180_v12 = vrot.slane %v179_v10, 1  ;;  %v189_v14 = vrot.slane %v188_v11, 1  ;;  %s417_s24 = sld [smem:[#allocation7 + $0x9]]  ;;  %v220_v22 = vstv %s414_s7  ;;  %s621_s7 = smov 124   ;;  %v299_v9 = vshrl.u32 %v298_v8, 7 }
  0x55   : > { %s780_s25 = sld [smem:[#allocation7 + $0x5]]  ;;  %v247_v21 = vstv %s419_s14  ;;  %s622_s14 = smov 122  }
  0x56   : > { %v181_v13 = vadd.f32 %v180_v12, %v179_v10  ;;  %v190_v16 = vmax.f32 %v188_v11, %v189_v14  ;;  %s782_s26 = sld [smem:[#allocation7 + $0x2]]  ;;  %v223_v23 = vstv %s415_s17  ;;  %v300_v10 = vsub.s32 0, %v299_v9  ;;  %s428_s17 = sshll.u32 %s660_s13, 6 }
  0x57   : > { %s784_s27 = sld [smem:[#allocation7 + $0xb]]  ;;  %v271_v27 = vstv %s778_s18  ;;  %s172_s18 = scalar_lea.vmem [#allocation8], %s410_s6 }
  0x58   : > { %v183_v15 = vmul.f32 0.25, %v181_v13  ;;  %s786_s30 = sld [smem:[#allocation7 + $0x4]]  ;;  %v211_v24 = vstv %s209_s22  ;;  %s321_s22 = sshll.u32 %s172_s18, 4  ;;  %s322_s22 = int_to_ptr.vmem [resolvable:$true] %s321_s22 }
  0x59   : > { %v215_v25 = vstv %s413_s23  ;;  %s789_s3 = sld [smem:[#allocation7 + $0xd]]  ;;  %s623_s13 = smov [#allocation8]  }
  0x5a   : > { %198 = vrot.lane.b32.xlu0 %v183_v15, %s616_s15  ;;  %v235_v28 = vstv %s417_s24  ;;  %s791_s4 = sld [smem:[#allocation7 + $0x6]] }
  0x5b   : > { %v268_v33 = vstv %s780_s25  ;;  %s319_s25 = scalar_lea.hbm %s842_s2, %s428_s17 }
  0x5c   : > { %v232_v34 = vstv %s782_s26  ;;  %s308_s26 = scalar_lea.sflag [#allocation5], %s758_s5 }
  0x5d   : > { %v259_v41 = vstv %s784_s27  ;;  %s543_s27 = scalar_lea.vmem %s322_s22, 64 }
  0x5e   : > { %204 = vrot.lane.b32.xlu0 %v190_v16, %s616_s15  ;;  %v256_v45 = vstv %s786_s30  ;;  %s619_s15 = smov 123   ;;  %p544_p9 = scmp.ne.s32.totalorder %s322_s22, %s543_s27 }
  0x5f   : > { %v283_v49 = vstv %s789_s3  ;;  %s547_s30 = sshll.u32 %s623_s13, 4  ;;  %s548_s30 = int_to_ptr.vmem [resolvable:$false] %s547_s30 }
  0x60   : > { %v280_v51 = vstv %s791_s4  ;;  %p545_p13 = pnand %p544_p9, %p859_p11  ;;  %s549_s6 = scalar_lea.vmem %s548_s30, 128 }
  0x61   : > { %p550_p2 = scmp.lt.s32.totalorder %s322_s22, %s548_s30  ;;  %p551_p1 = scmp.lt.s32.totalorder %s549_s6, %s543_s27 }
  0x62   : > { %p546_p10 = pneg %p545_p13 }
  0x63   : > { %p552_p0 = por %p551_p1, %p550_p2 }
  0x65   : > { %p553_p3 = pnand %p552_p0, %p546_p10 }
  0xcc   : > { %v199_v17 = vpop.permute.xlu0 %198 }
  0xcd   : > { %202 = vst.msk [vmem:[#allocation2] sm:$0x1] %vm201_vm3, %v199_v17 }
  0xd0   : > { %v205_v18 = vpop.permute.xlu0 %204 }
  0xd1   : > { %208 = vst.msk [vmem:[#allocation2 + $0x1] sm:$0x1] %vm201_vm3, %v205_v18 }
  0xd4   : > { %v210_v19 = vld [vmem:[#allocation2] sm:$0x1] }
  0xd5   : > { %v245_v29 = vmul.f32 %v244_v20, %v210_v19  ;;  %v221_v31 = vmul.f32 %v220_v22, %v210_v19  ;;  %v212_v35 = vmul.f32 %v211_v24, %v210_v19  ;;  %v269_v43 = vmul.f32 %v268_v33, %v210_v19 }
  0xd6   : > { %v233_v44 = vmul.f32 %v232_v34, %v210_v19  ;;  %v257_v50 = vmul.f32 %v256_v45, %v210_v19  ;;  %v281_v54 = vmul.f32 %v280_v51, %v210_v19 }
  0xd8   : > { %v214_v26 = vld [vmem:[#allocation2 + $0x1] sm:$0x1] }
  0xd9   : > { %v248_v30 = vmul.f32 %v247_v21, %v214_v26  ;;  %v224_v32 = vmul.f32 %v223_v23, %v214_v26  ;;  %v216_v36 = vmul.f32 %v215_v25, %v214_v26  ;;  %v272_v39 = vmul.f32 %v271_v27, %v214_v26 }
  0xda   : > { %v236_v40 = vmul.f32 %v235_v28, %v214_v26  ;;  %v260_v48 = vmul.f32 %v259_v41, %v214_v26  ;;  %v284_v53 = vmul.f32 %v283_v49, %v214_v26 }
  0xdb   : > { %v249_v37 = vadd.f32 %v248_v30, %v245_v29  ;;  %v225_v38 = vadd.f32 %v224_v32, %v221_v31  ;;  %v217_v42 = vadd.f32 %v216_v36, %v212_v35  ;;  %v273_v46 = vadd.f32 %v272_v39, %v269_v43 }
  0xdc   : > { %v237_v47 = vadd.f32 %v236_v40, %v233_v44  ;;  %v261_v52 = vadd.f32 %v260_v48, %v257_v50  ;;  %v285_v55 = vadd.f32 %v284_v53, %v281_v54 }
  0xdd   : > { %251 = vrot.lane.b32.xlu0 %v249_v37, %s617_s8  ;;  %227 = vrot.lane.b32.xlu1 %v225_v38, %s618_s19 }
  0xe1   : > { %275 = vrot.lane.b32.xlu0 %v273_v46, %s619_s15  ;;  %239 = vrot.lane.b32.xlu1 %v237_v47, %s620_s20 }
  0xe5   : > { %263 = vrot.lane.b32.xlu1 %v261_v52, %s621_s7 }
  0xe9   : > { %287 = vrot.lane.b32.xlu1 %v285_v55, %s622_s14 }
 0x14f   : > { %v228_v56 = vpop.permute.xlu1 %227  ;;  %v252_v58 = vpop.permute.xlu0 %251 }
 0x150   : > { %v230_v57 = vadd.f32 %v228_v56, %v217_v42 }
 0x153   : > { %v240_v59 = vpop.permute.xlu1 %239  ;;  %v276_v1 = vpop.permute.xlu0 %275 }
 0x154   : > { %v242_v60 = vadd.f32 %v240_v59, %v230_v57 }
 0x156   : > { %v254_v61 = vadd.f32 %v252_v58, %v242_v60 }
 0x157   : > { %v264_v62 = vpop.permute.xlu1 %263 }
 0x158   : > { %v266_v63 = vadd.f32 %v264_v62, %v254_v61 }
 0x15a   : > { %v278_v2 = vadd.f32 %v276_v1, %v266_v63 }
 0x15b   : > { %v288_v3 = vpop.permute.xlu1 %287 }
 0x15c   : > { %v290_v4 = vadd.f32 %v288_v3, %v278_v2 }
 0x15e   : > { %v426_v5 = vmul.f32 -1.442695, %v290_v4 }
 0x160   : > { %496 = vpow2.f32 %v426_v5 }
 0x16d   : > { %v497_v6 = vpop.eup %496 }
 0x16e   : > { %v294_v7 = vadd.f32 1.0, %v497_v6 }
 0x170   : > { %498 = vrcp.f32 %v294_v7 }
 0x17d   : > { %v499_v11 = vpop.eup %498 }
 0x17e   : > { %v301_v12 = vrot.slane %v499_v11, %v300_v10 }
 0x180   : > { %302 = vrot.lane.b32.xlu0 %v301_v12, %s619_s15 }
 0x1f2   : > { %v303_v13 = vpop.permute.xlu0 %302 }
 0x1f3   : > { %v305_v14 = vmul.f32 %v303_v13, %v772_v0 }
 0x1f5   : > { %306 = vst.msk [vmem:[%s172_s18] sm:$0xf] %vm174_vm0, %v305_v14 }
 0x1f6   : > { %556 = shalt.err (!%p553_p3)
}
 0x1f7   : > { %s557_s3 = scalar_lea.hbm %s319_s25, 64  ;;  %s561_s8 = scalar_lea.hbm %s842_s2, 128 }
 0x1f8   : > { %p558_p12 = scmp.ne.s32.totalorder %s319_s25, %s557_s3  ;;  %p562_p4 = scmp.lt.s32.totalorder %s319_s25, %s842_s2 }
 0x1f9   : > { %p563_p6 = scmp.lt.s32.totalorder %s561_s8, %s557_s3 }
 0x1fa   : > { %p559_p5 = pnand %p558_p12, %p859_p11 }
 0x1fb   : > { %p564_p8 = por %p563_p6, %p562_p4 }
 0x1fc   : > { %p560_p7 = pneg %p559_p5 }
 0x1fe   : > { %p565_p9 = pnand %p564_p8, %p560_p7 }
 0x200   : > { %568 = shalt.err (!%p565_p9)
}
 0x201   : > { %437 = dma.vmem_to_hbm [thread:$0]  (%p859_p11), %s322_s22, 64, %s319_s25, %s308_s26  }
 0x202 PF: > { %s333_s20 = sand.u32 1, %s599_s9   ;;  %p860_p13 = scmp.ne.s32.totalorder %s848_s16, 0 }
 0x203   : > { %p861_p10 = scmp.ge.s32.totalorder %s611_s12, 2  ;;  %s334_s7 = scalar_lea.sflag [#allocation5], %s333_s20 }
 0x205   : > { %p448_p2 = pnand %p861_p10, %p860_p13 }
 0x207   : > { %p449_p1 = pneg %p448_p2 }
 0x209   : > { %594 = dma.done.wait (%p449_p1), %s334_s7, 64  }
 0x20a   : > { %596 = vsyncadd (%p449_p1), %s334_s7, 4294967232  ;;  %p16_p0 = scmp.ge.s32.totalorder %s690_s21, 4   ;;  %s862_s9 = smov %s603_s10 }
 0x20b   : > { %s863_s10 = smov %s607_s11  ;;  %s864_s11 = smov %s714_s28 }
 0x20c   : > { %s865_s12 = smov %s690_s21  ;;  %18 = sbr.rel (!%p16_p0) target bundleno = 6 (0x6), region = 79 }
 0x211   :  { %339 = vsyncpa [#allocation4], 1 }
 0x212   :  { %341 = vsyncpa [#allocation4 + $0x1], 1 }
 0x213   :  { %342 = vsyncpa [#allocation5], 1 }
 0x214   :  { %344 = vsyncpa [#allocation5 + $0x1], 1 }
 0x215   :  { %345 = vsyncpa [#allocation6], 1 }
 0x216   :  { %347 = vsyncpa [#allocation6 + $0x1], 1 }

</bundles_post_ra>
